<compile_context>
chip_gen: v6e
topology: v6e:2x2x1
jax: 0.10.0
libtpu: 0.0.40
codegen_flags: <defaults>
</compile_context>

<pallas_src>
import functools
import math

import jax
import jax.numpy as jnp
from jax.experimental import pallas as pl
from jax.experimental.pallas import tpu as pltpu


# ---------------------------------------------------------------------------
# Kernel 1: first_lin   (dropout p=0.5 is identity in eval mode)
# ---------------------------------------------------------------------------
def first_lin_kernel(x_ref, w1_ref, b1_ref, h0_ref):
    h0_ref[...] = (
        jnp.dot(x_ref[...], w1_ref[...], preferred_element_type=jnp.float32)
        + b1_ref[...]
    ).astype(h0_ref.dtype)


# ---------------------------------------------------------------------------
# Kernel 2/3: GatedConv (A @ src, add-aggregation of edge_weight * x_j)
#             + GRUCell(conv_out, h0) + linear head
#   final=False: head = lin1 (H -> H); dropout p=0.2 identity in eval mode
#   final=True : head = out  (H -> C padded to 128 lanes) + log_softmax
# ---------------------------------------------------------------------------
def conv_gru_head_kernel(a_ref, src_ref, hid_ref,
                         w_ih_ref, b_ih_ref, w_hh_ref, b_hh_ref,
                         w_head_ref, b_head_ref,
                         o_ref, acc_ref, *, hidden, final):
    k = pl.program_id(1)

    @pl.when(k == 0)
    def _init():
        acc_ref[...] = jnp.zeros_like(acc_ref)

    # message passing: out[i] = sum_j A[i, j] * src[j]   (aggr='add', weighted edges)
    acc_ref[...] += jnp.dot(a_ref[...], src_ref[...],
                            preferred_element_type=jnp.float32)

    @pl.when(k == pl.num_programs(1) - 1)
    def _finalize():
        H = hidden
        inp = acc_ref[...]          # GRU input  = conv output (f32)
        hid = hid_ref[...]          # GRU hidden = h0 = first_lin(x)

        # PyTorch GRUCell, gate order [r | z | n]; weights stored pre-transposed.
        gi = jnp.dot(inp, w_ih_ref[...], preferred_element_type=jnp.float32) + b_ih_ref[...]
        gh = jnp.dot(hid, w_hh_ref[...], preferred_element_type=jnp.float32) + b_hh_ref[...]

        r = jax.nn.sigmoid(gi[:, 0 * H:1 * H] + gh[:, 0 * H:1 * H])
        z = jax.nn.sigmoid(gi[:, 1 * H:2 * H] + gh[:, 1 * H:2 * H])
        n = jnp.tanh(gi[:, 2 * H:3 * H] + r * gh[:, 2 * H:3 * H])
        g = (1.0 - z) * n + z * hid

        head = jnp.dot(g, w_head_ref[...], preferred_element_type=jnp.float32) + b_head_ref[...]

        if final:
            # padded class lanes carry bias -1e30 -> contribute 0 to the softmax sum
            m = jnp.max(head, axis=-1, keepdims=True)
            s = head - m
            lse = jnp.log(jnp.sum(jnp.exp(s), axis=-1, keepdims=True))
            o_ref[...] = (s - lse).astype(o_ref.dtype)
        else:
            o_ref[...] = head.astype(o_ref.dtype)


# ---------------------------------------------------------------------------
# pallas_call wrappers
# ---------------------------------------------------------------------------
_VMEM_LIMIT = 32 * 1024 * 1024  # valid on v5e/v6e (128 MiB) and v7x (64 MiB physical)


def _first_lin_call(x_pad, w1, b1, *, tm, hidden):
    n_pad, f = x_pad.shape
    const = lambda i: (0, 0)
    return pl.pallas_call(
        first_lin_kernel,
        out_shape=jax.ShapeDtypeStruct((n_pad, hidden), jnp.float32),
        grid_spec=pltpu.PrefetchScalarGridSpec(
            num_scalar_prefetch=0,
            grid=(n_pad // tm,),
            in_specs=[
                pl.BlockSpec((tm, f), lambda i: (i, 0)),
                pl.BlockSpec((f, hidden), const),
                pl.BlockSpec((1, hidden), const),
            ],
            out_specs=pl.BlockSpec((tm, hidden), lambda i: (i, 0)),
        ),
        compiler_params=pltpu.CompilerParams(
            dimension_semantics=("parallel",),
            vmem_limit_bytes=_VMEM_LIMIT,
        ),
        cost_estimate=pl.CostEstimate(
            flops=2 * n_pad * f * hidden,
            transcendentals=0,
            bytes_accessed=4 * (n_pad * f + f * hidden + hidden + n_pad * hidden),
        ),
    )(x_pad, w1, b1)


def _conv_gru_head_call(a_pad, src, hid, w_ih, b_ih, w_hh, b_hh, w_head, b_head,
                        *, tm, tk, hidden, final):
    n_pad = a_pad.shape[0]
    out_w = w_head.shape[1]
    const = lambda i, k: (0, 0)
    kernel = functools.partial(conv_gru_head_kernel, hidden=hidden, final=final)

    flops = (2 * n_pad * n_pad * hidden            # A @ src
             + 2 * n_pad * hidden * (6 * hidden)   # GRU ih + hh matmuls
             + 2 * n_pad * hidden * out_w          # head matmul
             + 12 * n_pad * hidden)                # gates / blend elementwise
    transcendentals = 3 * n_pad * hidden + (n_pad * out_w if final else 0)
    bytes_accessed = 4 * (n_pad * n_pad + 2 * n_pad * hidden + n_pad * out_w
                          + w_ih.size + w_hh.size + w_head.size
                          + b_ih.size + b_hh.size + b_head.size)

    return pl.pallas_call(
        kernel,
        out_shape=jax.ShapeDtypeStruct((n_pad, out_w), jnp.float32),
        grid_spec=pltpu.PrefetchScalarGridSpec(
            num_scalar_prefetch=0,
            grid=(n_pad // tm, n_pad // tk),       # reduction (neighbor) axis last
            in_specs=[
                pl.BlockSpec((tm, tk), lambda i, k: (i, k)),       # A row/col tile
                pl.BlockSpec((tk, hidden), lambda i, k: (k, 0)),   # src rows (neighbor block)
                pl.BlockSpec((tm, hidden), lambda i, k: (i, 0)),   # GRU hidden rows (this block)
                pl.BlockSpec((hidden, 3 * hidden), const),         # resident GRU/head weights
                pl.BlockSpec((1, 3 * hidden), const),
                pl.BlockSpec((hidden, 3 * hidden), const),
                pl.BlockSpec((1, 3 * hidden), const),
                pl.BlockSpec((hidden, out_w), const),
                pl.BlockSpec((1, out_w), const),
            ],
            out_specs=pl.BlockSpec((tm, out_w), lambda i, k: (i, 0)),
            scratch_shapes=[pltpu.VMEM((tm, hidden), jnp.float32)],
        ),
        compiler_params=pltpu.CompilerParams(
            dimension_semantics=("parallel", "arbitrary"),
            vmem_limit_bytes=_VMEM_LIMIT,
        ),
        cost_estimate=pl.CostEstimate(
            flops=flops, transcendentals=transcendentals,
            bytes_accessed=bytes_accessed),
    )(a_pad, src, hid, w_ih, b_ih, w_hh, b_hh, w_head, b_head)


def gated_gin_forward(x, a_dense, params, *, tm=128, tk=128):
    """Full GatedGIN forward (eval mode). Returns (N, num_class) log-probs."""
    N, _ = x.shape
    H = params["w1"].shape[1]
    C = params["wo"].shape[1]

    # pad node count so both tile sizes divide it
    mult = (tm * tk) // math.gcd(tm, tk)
    n_pad = ((N + mult - 1) // mult) * mult
    x_pad = jnp.pad(x, ((0, n_pad - N), (0, 0)))
    a_pad = jnp.pad(a_dense, ((0, n_pad - N), (0, n_pad - N)))

    # lane-dense output head: pad classes to a multiple of 128 lanes
    out_w = max(128, ((C + 127) // 128) * 128)
    wo_pad = jnp.zeros((H, out_w), jnp.float32).at[:, :C].set(params["wo"])
    bo_pad = jnp.full((1, out_w), -1e30, jnp.float32).at[:, :C].set(params["bo"])

    # TODO(synk): for large sparse graphs, replace the dense (N,N) adjacency with a
    # scalar-prefetched block-sparse gather (PrefetchScalarGridSpec + manual DMA).
    h0 = _first_lin_call(x_pad, params["w1"], params["b1"], tm=tm, hidden=H)

    l1 = _conv_gru_head_call(
        a_pad, h0, h0,
        params["w_ih"], params["b_ih"], params["w_hh"], params["b_hh"],
        params["wl1"], params["bl1"],
        tm=tm, tk=tk, hidden=H, final=False)

    out_pad = _conv_gru_head_call(
        a_pad, l1, h0,
        params["w_ih"], params["b_ih"], params["w_hh"], params["b_hh"],
        wo_pad, bo_pad,
        tm=tm, tk=tk, hidden=H, final=True)

    return out_pad[:N, :C]


# ---------------------------------------------------------------------------
# Glue: dense weighted adjacency matching GatedConv (aggr='add', no self-loops,
# no normalization, message = edge_weight * x_j, flow source->target).
# ---------------------------------------------------------------------------
def build_dense_adjacency(edge_index, edge_weight, num_nodes):
    src, dst = edge_index[0], edge_index[1]
    if edge_weight is None:
        edge_weight = jnp.ones(src.shape, jnp.float32)
    a = jnp.zeros((num_nodes, num_nodes), jnp.float32)
    return a.at[dst, src].add(edge_weight)


def init_params(key, features_num=32, hidden=32, num_class=2):
    ks = jax.random.split(key, 8)
    s = 0.1
    p = {}
    # first_lin: Linear(F, H), stored transposed -> (F, H)
    p["w1"] = s * jax.random.normal(ks[0], (features_num, hidden), jnp.float32)
    p["b1"] = jnp.full((1, hidden), 0.01, jnp.float32)
    # GRUCell(H, H): PyTorch gate order [r | z | n]; weight_ih/hh stored transposed -> (H, 3H)
    p["w_ih"] = s * jax.random.normal(ks[1], (hidden, 3 * hidden), jnp.float32)
    p["b_ih"] = s * jax.random.normal(ks[2], (1, 3 * hidden), jnp.float32)
    p["w_hh"] = s * jax.random.normal(ks[3], (hidden, 3 * hidden), jnp.float32)
    p["b_hh"] = s * jax.random.normal(ks[4], (1, 3 * hidden), jnp.float32)
    # lin1: Linear(H, H)
    p["wl1"] = s * jax.random.normal(ks[5], (hidden, hidden), jnp.float32)
    p["bl1"] = jnp.full((1, hidden), 0.02, jnp.float32)
    # out: Linear(H, C)
    p["wo"] = s * jax.random.normal(ks[6], (hidden, num_class), jnp.float32)
    p["bo"] = jnp.zeros((1, num_class), jnp.float32)
    # fuse_weight is a module parameter but unused in forward() -> omitted.
    return p


# ---------------------------------------------------------------------------
# Pure-JAX reference (same math) for a correctness check.
# ---------------------------------------------------------------------------
def gated_gin_reference(x, a, p):
    H = p["w1"].shape[1]

    def gru(inp, hid):
        gi = inp @ p["w_ih"] + p["b_ih"]
        gh = hid @ p["w_hh"] + p["b_hh"]
        r = jax.nn.sigmoid(gi[:, :H] + gh[:, :H])
        z = jax.nn.sigmoid(gi[:, H:2 * H] + gh[:, H:2 * H])
        n = jnp.tanh(gi[:, 2 * H:] + r * gh[:, 2 * H:])
        return (1.0 - z) * n + z * hid

    h0 = x @ p["w1"] + p["b1"]
    g1 = gru(a @ h0, h0)
    l1 = g1 @ p["wl1"] + p["bl1"]
    g2 = gru(a @ l1, h0)
    logits = g2 @ p["wo"] + p["bo"]
    return jax.nn.log_softmax(logits, axis=-1)


if __name__ == "__main__":
    key = jax.random.PRNGKey(0)
    k_x, k_ei, k_ew, k_p = jax.random.split(key, 4)

    N = 256            # nodes (2 row-blocks x 2 neighbor-blocks at 128-tiles)
    E = 1024           # edges
    FEATURES = 32
    HIDDEN = 32
    NUM_CLASS = 2

    x = jax.random.normal(k_x, (N, FEATURES), jnp.float32)
    edge_index = jax.random.randint(k_ei, (2, E), 0, N, jnp.int32)
    edge_weight = jax.random.uniform(k_ew, (E,), jnp.float32, 0.1, 1.0)

    a_dense = build_dense_adjacency(edge_index, edge_weight, N)
    params = init_params(k_p, FEATURES, HIDDEN, NUM_CLASS)

    out = gated_gin_forward(x, a_dense, params, tm=128, tk=128)
    out = jax.block_until_ready(out)

    assert out.shape == (N, NUM_CLASS)
    assert bool(jnp.all(jnp.isfinite(out)))
    # rows of log-softmax must exponentiate-and-sum to 1
    assert jnp.allclose(jnp.sum(jnp.exp(out), axis=-1), 1.0, atol=1e-4)

    # check against the pure-JAX reference
    with jax.default_matmul_precision("float32"):
        ref = jax.block_until_ready(gated_gin_reference(x, a_dense, params))
    assert jnp.allclose(out, ref, atol=2e-2), float(jnp.max(jnp.abs(out - ref)))

    print("KERNEL_OK")
</pallas_src>

<mosaic_0001>
module attributes {stable_mosaic.version = 11 : i64} {
  func.func @first_lin_kernel(%arg0: i32, %arg1: memref<128x32xf32, #tpu.memory_space<vmem>>, %arg2: memref<32x32xf32, #tpu.memory_space<vmem>>, %arg3: memref<1x32xf32, #tpu.memory_space<vmem>>, %arg4: memref<128x32xf32, #tpu.memory_space<vmem>>) attributes {dimension_semantics = [#tpu.dimension_semantics<parallel>], iteration_bounds = array<i64: 2>, scalar_prefetch = 0 : i64, scratch_operands = 0 : i64, tpu.core_type = #tpu.core_type<tc>, window_params = [{transform_indices = @transform_0, window_bounds = array<i64: 128, 32>}, {pipeline_mode = #tpu.pipeline_mode<synchronous>, transform_indices = @transform_1, window_bounds = array<i64: 32, 32>}, {pipeline_mode = #tpu.pipeline_mode<synchronous>, transform_indices = @transform_2, window_bounds = array<i64: 1, 32>}, {transform_indices = @transform_3, window_bounds = array<i64: 128, 32>}]} {
    %c0 = arith.constant 0 : index
    %c0_0 = arith.constant 0 : index
    %0 = vector.load %arg1[%c0, %c0_0] : memref<128x32xf32, #tpu.memory_space<vmem>>, vector<128x32xf32>
    %c0_1 = arith.constant 0 : index
    %c0_2 = arith.constant 0 : index
    %1 = vector.load %arg2[%c0_1, %c0_2] : memref<32x32xf32, #tpu.memory_space<vmem>>, vector<32x32xf32>
    %cst = arith.constant dense<0.000000e+00> : vector<128x32xf32>
    %2 = tpu.matmul %0, %1, %cst {dimension_numbers = #tpu.dot_dimension_numbers<[1], [0], [0], [1], [0, 0, 1, 1], [], []>} : vector<128x32xf32>, vector<32x32xf32>, vector<128x32xf32> -> vector<128x32xf32>
    %c0_3 = arith.constant 0 : index
    %c0_4 = arith.constant 0 : index
    %3 = vector.load %arg3[%c0_3, %c0_4] : memref<1x32xf32, #tpu.memory_space<vmem>>, vector<1x32xf32>
    %4 = vector.broadcast %3 : vector<1x32xf32> to vector<128x32xf32>
    %5 = arith.addf %2, %4 : vector<128x32xf32>
    %c0_5 = arith.constant 0 : index
    %c0_6 = arith.constant 0 : index
    %6 = vector.load %arg4[%c0_5, %c0_6] : memref<128x32xf32, #tpu.memory_space<vmem>>, vector<128x32xf32>
    tpu.vector_store %arg4[%c0_5, %c0_6], %5 {strides = array<i32>} : memref<128x32xf32, #tpu.memory_space<vmem>>, vector<128x32xf32>,
    return
  }
  func.func @transform_0(%arg0: i32) -> (i32, i32) {
    %c0_i32 = arith.constant 0 : i32
    %c0_i32_0 = arith.constant 0 : i32
    return %arg0, %c0_i32 : i32, i32
  }
  func.func @transform_1(%arg0: i32) -> (i32, i32) {
    %c0_i32 = arith.constant 0 : i32
    %c0_i32_0 = arith.constant 0 : i32
    %c0_i32_1 = arith.constant 0 : i32
    return %c0_i32, %c0_i32_0 : i32, i32
  }
  func.func @transform_2(%arg0: i32) -> (i32, i32) {
    %c0_i32 = arith.constant 0 : i32
    %c0_i32_0 = arith.constant 0 : i32
    %c0_i32_1 = arith.constant 0 : i32
    return %c0_i32, %c0_i32_0 : i32, i32
  }
  func.func @transform_3(%arg0: i32) -> (i32, i32) {
    %c0_i32 = arith.constant 0 : i32
    %c0_i32_0 = arith.constant 0 : i32
    return %arg0, %c0_i32 : i32, i32
  }
}

</mosaic_0001>

<bundles_post_ra>
// kernel: tpu_custom_call.1
= control target key start
LH: loop header
LB: loop body
LE: loop exit
PB: predicated region body
PF: predicated region fallthrough
CT: control target
= control target key end

     0   :  { %s591_s12 = smov 0   ;;  %s698_s0 = inlined_call_operand.vmem [shape: f32[256,32], index: 0, kind: input, shape index: {}]   ;;  %s699_s1 = inlined_call_operand.vmem [shape: f32[32,32], index: 1, kind: input, shape index: {}]   ;;  %s700_s2 = inlined_call_operand.vmem [shape: f32[1,32], index: 2, kind: input, shape index: {}]   ;;  %s701_s3 = inlined_call_operand.vmem [shape: f32[256,32], index: 3, kind: output, shape index: {}]  }
   0x1 LB: > { %s467_s13 = sadd.s32 4294967295, %s569_s12   ;;  %p471_p0 = scmp.ge.s32.totalorder %s569_s12, 1  ;;  %s569_s12 = sphi %s591_s12, %s13_s12  }
   0x2   : > { %p138_p1 = scmp.lt.s32.totalorder %s569_s12, 3 }
   0x4   : > { %p139_p2 = pnand %p471_p0, %p138_p1 }
   0x5   : > { %s472_s18 = sshll.u32 (!%p139_p2), %s467_s13, 4 }
   0x6   : > { %142 = sbr.rel (%p139_p2) target bundleno = 231 (0xe7), region = 32  ;;  %p163_p3 = scmp.lt.s32.totalorder (!%p139_p2), %s472_s18, 31 }
   0xb   : > { %v193_v0 = vld [vmem:[%s699_s1 + $0x18] sm:$0xff]  ;;  %v192_v1 = vld [vmem:[%s699_s1 + $0x10] sm:$0xff]  ;;  %v191_v2 = vld [vmem:[%s699_s1 + $0x8] sm:$0xff]  ;;  %s703_s18 = smov (!%p163_p3, %s472_s18), 31  ;;  %vm201_vm0 = vcmask 261120  }
   0xc   : > { %515 = vmatprep.subr.mxu0 %v193_v0  ;;  %547 = vmatprep.subr.mxu1 %v193_v0  ;;  %v190_v3 = vld [vmem:[%s699_s1] sm:$0xff]  ;;  %s473_s23 = sshll.u32 %s703_s18, 3 }
   0xd   : > { %516 = vmatpush3.msra.mxu0 %v193_v0  ;;  %551 = vmatpush3.msra.mxu1 %v193_v0  ;;  %s619_s26 = scalar_lea.vmem %s698_s0, %s473_s23  ;;  %v476_v20 = vld [vmem:[%s700_s2] ss:$0 sm:$0xff]  ;;  %s661_s4 = scalar_lea.vmem %s701_s3, %s473_s23 }
   0xe   : > { %517 = vmatprep.subr.mxu0 %v192_v1  ;;  %548 = vmatprep.subr.mxu1 %v192_v1  ;;  %v174_v4 = vld [vmem:[%s619_s26] sm:$0xff]  ;;  %v175_v6 = vld [vmem:[%s619_s26 + $0x8] sm:$0xff]  ;;  %v176_v8 = vld [vmem:[%s619_s26 + $0x10] sm:$0xff] }
   0xf   : > { %518 = vmatpush3.msra.mxu0 %v192_v1  ;;  %552 = vmatpush3.msra.mxu1 %v192_v1  ;;  %v182_v5 = vld [vmem:[%s619_s26 + $0x40] sm:$0xff]  ;;  %v183_v7 = vld [vmem:[%s619_s26 + $0x48] sm:$0xff]  ;;  %v184_v9 = vld [vmem:[%s619_s26 + $0x50] sm:$0xff] }
  0x10   : > { %519 = vmatprep.subr.mxu0 %v191_v2  ;;  %549 = vmatprep.subr.mxu1 %v191_v2  ;;  %v177_v10 = vld [vmem:[%s619_s26 + $0x18] sm:$0xff]  ;;  %v178_v12 = vld [vmem:[%s619_s26 + $0x20] sm:$0xff]  ;;  %v179_v14 = vld [vmem:[%s619_s26 + $0x28] sm:$0xff] }
  0x11   : > { %520 = vmatpush3.msra.mxu0 %v191_v2  ;;  %553 = vmatpush3.msra.mxu1 %v191_v2  ;;  %v185_v11 = vld [vmem:[%s619_s26 + $0x58] sm:$0xff]  ;;  %v186_v13 = vld [vmem:[%s619_s26 + $0x60] sm:$0xff]  ;;  %v187_v15 = vld [vmem:[%s619_s26 + $0x68] sm:$0xff] }
  0x12   : > { %521 = vmatprep.subr.mxu0 %v190_v3  ;;  %550 = vmatprep.subr.mxu1 %v190_v3  ;;  %v180_v16 = vld [vmem:[%s619_s26 + $0x30] sm:$0xff]  ;;  %v181_v18 = vld [vmem:[%s619_s26 + $0x38] sm:$0xff] }
  0x13   : > { %522 = vmatpush3.msra.mxu0 %v190_v3  ;;  %554 = vmatpush3.msra.mxu1 %v190_v3  ;;  %v188_v17 = vld [vmem:[%s619_s26 + $0x70] sm:$0xff]  ;;  %v189_v19 = vld [vmem:[%s619_s26 + $0x78] sm:$0xff] }
  0x14   : > { %523 = vmatprep.mubr.msk.f32.mxu0 %vm201_vm0, %v174_v4  ;;  %535 = vmatprep.mubr.msk.f32.mxu1 %vm201_vm0, %v182_v5 }
  0x15   : > { %524 = vmatmul.mubr.msk.f32.vlgmr.msra.gmra.mxu0 %vm201_vm0, %v175_v6  ;;  %536 = vmatmul.mubr.msk.f32.vlgmr.msra.gmra.mxu1 %vm201_vm0, %v183_v7 }
  0x16   : > { %526 = vmatprep.mubr.msk.f32.mxu0 %vm201_vm0, %v176_v8  ;;  %538 = vmatprep.mubr.msk.f32.mxu1 %vm201_vm0, %v184_v9 }
  0x19   : > { %527 = vmatmul.mubr.msk.f32.gmra.mxu0 %vm201_vm0, %v177_v10  ;;  %539 = vmatmul.mubr.msk.f32.gmra.mxu1 %vm201_vm0, %v185_v11 }
  0x1a   : > { %529 = vmatprep.mubr.msk.f32.mxu0 %vm201_vm0, %v178_v12  ;;  %541 = vmatprep.mubr.msk.f32.mxu1 %vm201_vm0, %v186_v13 }
  0x1d   : > { %530 = vmatmul.mubr.msk.f32.gmra.mxu0 %vm201_vm0, %v179_v14  ;;  %542 = vmatmul.mubr.msk.f32.gmra.mxu1 %vm201_vm0, %v187_v15 }
  0x1e   : > { %532 = vmatprep.mubr.msk.f32.mxu0 %vm201_vm0, %v180_v16  ;;  %544 = vmatprep.mubr.msk.f32.mxu1 %vm201_vm0, %v188_v17 }
  0x21   : > { %533 = vmatmul.mubr.msk.f32.gmra.mxu0 %vm201_vm0, %v181_v18  ;;  %545 = vmatmul.mubr.msk.f32.gmra.mxu1 %vm201_vm0, %v189_v19 }
  0xd5   : > { %v525_v21 = vpop.f32.mrf.mxu0  ;;  %v537_v22 = vpop.f32.mrf.mxu1 }
  0xd6   : > { %v322_v23 = vadd.f32 %v525_v21, %v476_v20  ;;  %v362_v24 = vadd.f32 %v537_v22, %v476_v20 }
  0xd7   : > { %v316_v25 = vpop.f32.mrf.mxu0  ;;  %v356_v26 = vpop.f32.mrf.mxu1 }
  0xd8   : > { %396 = vst.msk [vmem:[%s661_s4 + $0x8] sm:$0xff] %vm201_vm0, %v322_v23  ;;  %404 = vst.msk [vmem:[%s661_s4 + $0x48] sm:$0xff] %vm201_vm0, %v362_v24  ;;  %v317_v27 = vadd.f32 %v476_v20, %v316_v25  ;;  %v357_v28 = vadd.f32 %v476_v20, %v356_v26 }
  0xd9   : > { %v528_v29 = vpop.f32.mrf.mxu0  ;;  %v540_v30 = vpop.f32.mrf.mxu1 }
  0xda   : > { %395 = vst.msk [vmem:[%s661_s4] sm:$0xff] %vm201_vm0, %v317_v27  ;;  %403 = vst.msk [vmem:[%s661_s4 + $0x40] sm:$0xff] %vm201_vm0, %v357_v28  ;;  %v332_v31 = vadd.f32 %v528_v29, %v476_v20  ;;  %v372_v32 = vadd.f32 %v540_v30, %v476_v20 }
  0xdb   : > { %v326_v33 = vpop.f32.mrf.mxu0  ;;  %v366_v34 = vpop.f32.mrf.mxu1 }
  0xdc   : > { %398 = vst.msk [vmem:[%s661_s4 + $0x18] sm:$0xff] %vm201_vm0, %v332_v31  ;;  %406 = vst.msk [vmem:[%s661_s4 + $0x58] sm:$0xff] %vm201_vm0, %v372_v32  ;;  %v327_v35 = vadd.f32 %v476_v20, %v326_v33  ;;  %v367_v36 = vadd.f32 %v476_v20, %v366_v34 }
  0xdd   : > { %v531_v37 = vpop.f32.mrf.mxu0  ;;  %v543_v38 = vpop.f32.mrf.mxu1 }
  0xde   : > { %397 = vst.msk [vmem:[%s661_s4 + $0x10] sm:$0xff] %vm201_vm0, %v327_v35  ;;  %405 = vst.msk [vmem:[%s661_s4 + $0x50] sm:$0xff] %vm201_vm0, %v367_v36  ;;  %v342_v39 = vadd.f32 %v531_v37, %v476_v20  ;;  %v382_v40 = vadd.f32 %v543_v38, %v476_v20 }
  0xdf   : > { %v336_v41 = vpop.f32.mrf.mxu0  ;;  %v376_v42 = vpop.f32.mrf.mxu1 }
  0xe0   : > { %400 = vst.msk [vmem:[%s661_s4 + $0x28] sm:$0xff] %vm201_vm0, %v342_v39  ;;  %408 = vst.msk [vmem:[%s661_s4 + $0x68] sm:$0xff] %vm201_vm0, %v382_v40  ;;  %v337_v43 = vadd.f32 %v476_v20, %v336_v41  ;;  %v377_v44 = vadd.f32 %v476_v20, %v376_v42 }
  0xe1   : > { %v534_v45 = vpop.f32.mrf.mxu0  ;;  %v546_v46 = vpop.f32.mrf.mxu1 }
  0xe2   : > { %399 = vst.msk [vmem:[%s661_s4 + $0x20] sm:$0xff] %vm201_vm0, %v337_v43  ;;  %407 = vst.msk [vmem:[%s661_s4 + $0x60] sm:$0xff] %vm201_vm0, %v377_v44  ;;  %v352_v47 = vadd.f32 %v534_v45, %v476_v20  ;;  %v392_v48 = vadd.f32 %v546_v46, %v476_v20 }
  0xe3   : > { %v346_v49 = vpop.f32.mrf.mxu0  ;;  %v386_v50 = vpop.f32.mrf.mxu1 }
  0xe4   : > { %402 = vst.msk [vmem:[%s661_s4 + $0x38] sm:$0xff] %vm201_vm0, %v352_v47  ;;  %410 = vst.msk [vmem:[%s661_s4 + $0x78] sm:$0xff] %vm201_vm0, %v392_v48  ;;  %v347_v51 = vadd.f32 %v476_v20, %v346_v49  ;;  %v387_v52 = vadd.f32 %v476_v20, %v386_v50 }
  0xe6   : > { %401 = vst.msk [vmem:[%s661_s4 + $0x30] sm:$0xff] %vm201_vm0, %v347_v51  ;;  %409 = vst.msk [vmem:[%s661_s4 + $0x70] sm:$0xff] %vm201_vm0, %v387_v52 }
  0xe7 PF: > { %s13_s12 = sadd.s32 1, %s569_s12  }
  0xe8   : > { %p10_p4 = scmp.ge.s32.totalorder %s13_s12, 4  }
  0xea   :  { %12 = sbr.rel (!%p10_p4) target bundleno = 1 (0x1), region = 62 }

</bundles_post_ra>
